<compile_context>
chip_gen: v7x
topology: tpu7x:2x2x1
jax: 0.10.0
libtpu: 0.0.40
codegen_flags: <defaults>
</compile_context>

<pallas_src>
import functools
import math

import jax
import jax.numpy as jnp
from jax.experimental import pallas as pl
from jax.experimental.pallas import tpu as pltpu


def _instance_dropout_kernel(threshold, seed_ref, x_ref, o_ref):
    block_rows, lanes = x_ref.shape
    row0 = pl.program_id(0) * block_rows

    # Global element index of every lane in this tile (counter for the hash).
    r = jax.lax.broadcasted_iota(jnp.int32, (block_rows, lanes), 0)
    c = jax.lax.broadcasted_iota(jnp.int32, (block_rows, lanes), 1)
    idx = ((row0 + r) * lanes + c).astype(jnp.uint32)

    # Mix the seed in, then run the murmur3 fmix32 finalizer (pure uint32
    # mul/xor/shift — all VPU ops, no stateful TPU PRNG needed).
    seed = seed_ref[0].astype(jnp.uint32)
    h = idx * jnp.uint32(0x9E3779B9) + seed * jnp.uint32(0x85EBCA6B)
    h = h ^ (h >> jnp.uint32(16))
    h = h * jnp.uint32(0x85EBCA6B)
    h = h ^ (h >> jnp.uint32(13))
    h = h * jnp.uint32(0xC2B2AE35)
    h = h ^ (h >> jnp.uint32(16))

    # Integer threshold compare: keep with probability keep_prob.
    keep = h < jnp.uint32(threshold)
    xv = x_ref[...]
    o_ref[...] = jnp.where(keep, xv, jnp.zeros_like(xv))


def instance_dropout(x, drop_rate: float, seed: int, *, training: bool = True):
    """Dropout without rescaling: out = x * Bernoulli(1 - drop_rate) mask."""
    if (not training) or drop_rate == 0.0:
        return x

    orig_shape = x.shape
    dtype = x.dtype
    n = math.prod(orig_shape)

    LANES = 512                                   # lane-dense slab width (k*128)
    itemsize = jnp.dtype(dtype).itemsize
    sub = max(8, 32 // itemsize)                  # sublane packing: 8/16/32

    # Byte-budgeted row tile: ~2 MiB per block -> ~8 MiB working set with
    # in+out double-buffering (fits v5e's 16 MiB default scoped VMEM).
    target_block_bytes = 2 << 20
    budget_rows = max(sub, (target_block_bytes // (LANES * itemsize)) // sub * sub)

    rows_needed = -(-n // LANES)                           # ceil(n / LANES)
    tile_rows = min(budget_rows, -(-rows_needed // sub) * sub)
    rows = -(-rows_needed // tile_rows) * tile_rows        # pad to whole tiles
    n_pad = rows * LANES

    xf = x.reshape(-1)
    if n_pad != n:
        xf = jnp.pad(xf, (0, n_pad - n))
    x2 = xf.reshape(rows, LANES)

    keep_prob = 1.0 - float(drop_rate)
    threshold = min(max(int(round(keep_prob * 4294967296.0)), 0), 4294967295)

    kernel = functools.partial(_instance_dropout_kernel, threshold)
    seed_arr = jnp.asarray([seed], dtype=jnp.int32)

    out2 = pl.pallas_call(
        kernel,
        out_shape=jax.ShapeDtypeStruct((rows, LANES), dtype),
        grid_spec=pltpu.PrefetchScalarGridSpec(
            num_scalar_prefetch=1,                 # seed lands in SMEM
            grid=(rows // tile_rows,),
            in_specs=[pl.BlockSpec((tile_rows, LANES), lambda i, sref: (i, 0))],
            out_specs=pl.BlockSpec((tile_rows, LANES), lambda i, sref: (i, 0)),
        ),
        compiler_params=pltpu.CompilerParams(
            # Hash is grid-invariant -> tiles are independent; lets v7x shard
            # the grid across both TensorCores (neutral on v5e/v6e).
            dimension_semantics=("parallel",),
        ),
    )(seed_arr, x2)

    return out2.reshape(-1)[:n].reshape(orig_shape)


if __name__ == "__main__":
    key = jax.random.PRNGKey(0)
    # MIL-style instance features: (batch=2, n_instances=8, hidden=32)
    x = jax.random.normal(key, (2, 8, 32), dtype=jnp.float32)

    drop_rate = 0.3
    out = instance_dropout(x, drop_rate, seed=1234, training=True)
    out = jax.block_until_ready(out)
    assert out.shape == x.shape and out.dtype == x.dtype

    # Every output element is either exactly x (kept) or exactly 0 (dropped);
    # no 1/(1-p) rescaling is applied.
    assert bool(jnp.all((out == x) | (out == 0.0)))

    # Eval mode / drop_rate==0 are identity passthroughs.
    assert bool(jnp.all(instance_dropout(x, drop_rate, 1, training=False) == x))
    assert bool(jnp.all(instance_dropout(x, 0.0, 1, training=True) == x))

    # Loose statistical check on a slightly larger slab: keep-rate ~= 1 - p.
    xb = jnp.ones((128, 512), dtype=jnp.float32)
    ob = jax.block_until_ready(instance_dropout(xb, drop_rate, seed=7, training=True))
    keep_frac = float(jnp.mean((ob != 0.0).astype(jnp.float32)))
    assert abs(keep_frac - (1.0 - drop_rate)) < 0.05, keep_frac

    print("KERNEL_OK")
</pallas_src>

<mosaic_0001>
module attributes {stable_mosaic.version = 11 : i64} {
  func.func @_instance_dropout_kernel(%arg0: i32, %arg1: memref<1xi32, #tpu.memory_space<smem>>, %arg2: memref<8x512xf32, #tpu.memory_space<vmem>>, %arg3: memref<8x512xf32, #tpu.memory_space<vmem>>) attributes {dimension_semantics = [#tpu.dimension_semantics<parallel>], iteration_bounds = array<i64: 1>, scalar_prefetch = 1 : i64, scratch_operands = 0 : i64, tpu.core_type = #tpu.core_type<tc>, window_params = [{transform_indices = @transform_0, window_bounds = array<i64: 8, 512>}, {transform_indices = @transform_1, window_bounds = array<i64: 8, 512>}]} {
    %c8_i32 = arith.constant 8 : i32
    %0 = arith.muli %arg0, %c8_i32 : i32
    %1 = tpu.iota {dimensions = array<i32: 0>} : vector<8x512xi32>
    %2 = tpu.iota {dimensions = array<i32: 1>} : vector<8x512xi32>
    %3 = vector.broadcast %0 : i32 to vector<8x512xi32>
    %4 = arith.addi %3, %1 : vector<8x512xi32>
    %c512_i32 = arith.constant 512 : i32
    %5 = vector.broadcast %c512_i32 : i32 to vector<8x512xi32>
    %6 = arith.muli %4, %5 : vector<8x512xi32>
    %7 = arith.addi %6, %2 : vector<8x512xi32>
    %c0 = arith.constant 0 : index
    %8 = memref.load %arg1[%c0] : memref<1xi32, #tpu.memory_space<smem>>
    %c-1640531527_i32 = arith.constant -1640531527 : i32
    %9 = vector.broadcast %c-1640531527_i32 : i32 to vector<8x512xi32>
    %10 = arith.muli %7, %9 : vector<8x512xi32>
    %c-2048144789_i32 = arith.constant -2048144789 : i32
    %11 = arith.muli %8, %c-2048144789_i32 : i32
    %12 = vector.broadcast %11 : i32 to vector<8x512xi32>
    %13 = arith.addi %10, %12 : vector<8x512xi32>
    %c16_i32 = arith.constant 16 : i32
    %14 = vector.broadcast %c16_i32 : i32 to vector<8x512xi32>
    %15 = arith.shrui %13, %14 : vector<8x512xi32>
    %16 = arith.xori %13, %15 : vector<8x512xi32>
    %c-2048144789_i32_0 = arith.constant -2048144789 : i32
    %17 = vector.broadcast %c-2048144789_i32_0 : i32 to vector<8x512xi32>
    %18 = arith.muli %16, %17 : vector<8x512xi32>
    %c13_i32 = arith.constant 13 : i32
    %19 = vector.broadcast %c13_i32 : i32 to vector<8x512xi32>
    %20 = arith.shrui %18, %19 : vector<8x512xi32>
    %21 = arith.xori %18, %20 : vector<8x512xi32>
    %c-1028477387_i32 = arith.constant -1028477387 : i32
    %22 = vector.broadcast %c-1028477387_i32 : i32 to vector<8x512xi32>
    %23 = arith.muli %21, %22 : vector<8x512xi32>
    %c16_i32_1 = arith.constant 16 : i32
    %24 = vector.broadcast %c16_i32_1 : i32 to vector<8x512xi32>
    %25 = arith.shrui %23, %24 : vector<8x512xi32>
    %26 = arith.xori %23, %25 : vector<8x512xi32>
    %c-1288490189_i32 = arith.constant -1288490189 : i32
    %27 = vector.broadcast %c-1288490189_i32 : i32 to vector<8x512xi32>
    %28 = arith.cmpi ult, %26, %27 : vector<8x512xi32>
    %c0_2 = arith.constant 0 : index
    %c0_3 = arith.constant 0 : index
    %29 = vector.load %arg2[%c0_2, %c0_3] : memref<8x512xf32, #tpu.memory_space<vmem>>, vector<8x512xf32>
    %cst = arith.constant 0.000000e+00 : f32
    %30 = vector.broadcast %cst : f32 to vector<8x512xf32>
    %31 = arith.select %28, %29, %30 : vector<8x512xi1>, vector<8x512xf32>
    %c0_4 = arith.constant 0 : index
    %c0_5 = arith.constant 0 : index
    %32 = vector.load %arg3[%c0_4, %c0_5] : memref<8x512xf32, #tpu.memory_space<vmem>>, vector<8x512xf32>
    tpu.vector_store %arg3[%c0_4, %c0_5], %31 {strides = array<i32>} : memref<8x512xf32, #tpu.memory_space<vmem>>, vector<8x512xf32>,
    return
  }
  func.func @transform_0(%arg0: i32, %arg1: memref<1xi32, #tpu.memory_space<smem>>) -> (i32, i32) {
    %c0_i32 = arith.constant 0 : i32
    %c0_i32_0 = arith.constant 0 : i32
    return %arg0, %c0_i32 : i32, i32
  }
  func.func @transform_1(%arg0: i32, %arg1: memref<1xi32, #tpu.memory_space<smem>>) -> (i32, i32) {
    %c0_i32 = arith.constant 0 : i32
    %c0_i32_0 = arith.constant 0 : i32
    return %arg0, %c0_i32 : i32, i32
  }
}

</mosaic_0001>

<bundles_post_ra>
// kernel: tpu_custom_call.1
= control target key start
LH: loop header
LB: loop body
LE: loop exit
PB: predicated region body
PF: predicated region fallthrough
CT: control target
= control target key end

     0   :  { %8 = vsyncpa [#allocation5], 0  ;;  %s206_s0 = inlined_call_operand.<no memory space> [shape: s32[1], index: 0, kind: input, shape index: {}]   ;;  %s207_s1 = inlined_call_operand.hbm [shape: f32[8,512], index: 1, kind: input, shape index: {}]   ;;  %s208_s2 = inlined_call_operand.hbm [shape: f32[8,512], index: 2, kind: output, shape index: {}]  }
   0x1   :  { %9 = vsyncpa [#allocation6], 0  ;;  %s162_s9 = smov [#allocation4]   ;;  %s114_s13 = scalar_lea.hbm %s207_s1, 512 }
   0x2   :  { %s16_s10 = sshll.u32 %s162_s9, 4  ;;  %p115_p0 = scmp.ne.s32.totalorder %s207_s1, %s114_s13  ;;  %s17_s10 = int_to_ptr.vmem [resolvable:$true] %s16_s10 }
   0x3   :  { %p118_p1 = scmp.lt.u32.totalorder %s114_s13, %s207_s1 }
   0x5   :  { %p120_p2 = pnand %p118_p1, %p115_p0 }
   0x7   :  { %123 = shalt.err (!%p120_p2)
}
   0x8   :  { %s124_s18 = scalar_lea.vmem %s17_s10, 512  ;;  %p129_p4 = scmp.lt.s32.totalorder %s17_s10, %s17_s10 }
   0x9   :  { %p125_p3 = scmp.ne.s32.totalorder %s17_s10, %s124_s18  ;;  %p130_p5 = scmp.lt.s32.totalorder %s124_s18, %s124_s18 }
   0xb   :  { %p131_p6 = por %p130_p5, %p129_p4 }
   0xd   :  { %p132_p7 = pnand %p131_p6, %p125_p3 }
   0xf   :  { %135 = shalt.err (!%p132_p7)
}
  0x10   :  { %19 = dma.hbm_to_vmem [thread:$0]  %s207_s1, 512, %s17_s10, [#allocation5]  }
  0x11   :  { %158 = dma.done.wait [#allocation5], 512  }
  0x12   :  { %159 = vsyncadd [#allocation5], 4294966784  ;;  %v24_v0 = vlaneseq  ;;  %s43_s23 = smul.u32 2246822507, %s206_s0  ;;  %v85_v49 = vld [vmem:[#allocation4] sm:$0xff]  ;;  %v86_v51 = vld [vmem:[#allocation4 + $0x8] sm:$0xff] }
  0x13   :  { %s163_s0 = smov [#allocation7]   ;;  %v87_v53 = vld [vmem:[#allocation4 + $0x10] sm:$0xff]  ;;  %v88_v55 = vld [vmem:[#allocation4 + $0x18] sm:$0xff] }
  0x14   :  { %v25_v1 = vshrl.u32 %v24_v0, 7  ;;  %v27_v2 = vand.u32 127, %v24_v0  ;;  %v44_v11 = vstv %s43_s23  ;;  %s103_s1 = sshll.u32 %s163_s0, 4  ;;  %s104_s1 = int_to_ptr.vmem [resolvable:$true] %s103_s1 }
  0x15   :  { %s136_s24 = scalar_lea.vmem %s104_s1, 512  ;;  %p141_p9 = scmp.lt.s32.totalorder %s104_s1, %s104_s1 }
  0x16   :  { %v33_v3 = vmul.u32 512, %v25_v1  ;;  %v28_v4 = vadd.s32 128, %v27_v2  ;;  %v29_v5 = vadd.s32 256, %v27_v2  ;;  %v30_v6 = vadd.s32 384, %v27_v2  ;;  %p137_p8 = scmp.ne.s32.totalorder %s104_s1, %s136_s24  ;;  %p142_p10 = scmp.lt.s32.totalorder %s136_s24, %s136_s24 }
  0x18   :  { %v34_v7 = vadd.s32 %v33_v3, %v27_v2  ;;  %v35_v8 = vadd.s32 %v33_v3, %v28_v4  ;;  %v36_v9 = vadd.s32 %v33_v3, %v29_v5  ;;  %v37_v10 = vadd.s32 %v33_v3, %v30_v6  ;;  %p143_p11 = por %p142_p10, %p141_p9 }
  0x1a   :  { %v39_v12 = vmul.u32 2654435769, %v34_v7  ;;  %v40_v13 = vmul.u32 2654435769, %v35_v8  ;;  %p144_p12 = pnand %p143_p11, %p137_p8 }
  0x1b   :  { %v41_v14 = vmul.u32 2654435769, %v36_v9  ;;  %v42_v15 = vmul.u32 2654435769, %v37_v10 }
  0x1c   :  { %v45_v16 = vadd.s32 %v44_v11, %v39_v12  ;;  %v46_v17 = vadd.s32 %v44_v11, %v40_v13 }
  0x1d   :  { %v47_v18 = vadd.s32 %v44_v11, %v41_v14  ;;  %v48_v19 = vadd.s32 %v44_v11, %v42_v15 }
  0x1e   :  { %v49_v20 = vshrl.u32 %v45_v16, 16  ;;  %v50_v21 = vshrl.u32 %v46_v17, 16 }
  0x1f   :  { %v51_v22 = vshrl.u32 %v47_v18, 16  ;;  %v52_v23 = vshrl.u32 %v48_v19, 16 }
  0x20   :  { %v53_v24 = vxor.u32 %v49_v20, %v45_v16  ;;  %v54_v25 = vxor.u32 %v50_v21, %v46_v17 }
  0x21   :  { %v55_v26 = vxor.u32 %v51_v22, %v47_v18  ;;  %v56_v27 = vxor.u32 %v52_v23, %v48_v19 }
  0x22   :  { %v57_v28 = vmul.u32 2246822507, %v53_v24  ;;  %v58_v29 = vmul.u32 2246822507, %v54_v25 }
  0x23   :  { %v59_v30 = vmul.u32 2246822507, %v55_v26  ;;  %v60_v31 = vmul.u32 2246822507, %v56_v27 }
  0x24   :  { %v61_v32 = vshrl.u32 %v57_v28, 13  ;;  %v62_v33 = vshrl.u32 %v58_v29, 13 }
  0x25   :  { %v63_v34 = vshrl.u32 %v59_v30, 13  ;;  %v64_v35 = vshrl.u32 %v60_v31, 13 }
  0x26   :  { %v65_v36 = vxor.u32 %v61_v32, %v57_v28  ;;  %v66_v37 = vxor.u32 %v62_v33, %v58_v29 }
  0x27   :  { %v67_v38 = vxor.u32 %v63_v34, %v59_v30  ;;  %v68_v39 = vxor.u32 %v64_v35, %v60_v31 }
  0x28   :  { %v69_v40 = vmul.u32 3266489909, %v65_v36  ;;  %v70_v41 = vmul.u32 3266489909, %v66_v37 }
  0x29   :  { %v71_v42 = vmul.u32 3266489909, %v67_v38  ;;  %v72_v43 = vmul.u32 3266489909, %v68_v39 }
  0x2a   :  { %v73_v44 = vshrl.u32 %v69_v40, 16  ;;  %v74_v45 = vshrl.u32 %v70_v41, 16 }
  0x2b   :  { %v75_v46 = vshrl.u32 %v71_v42, 16  ;;  %v76_v47 = vshrl.u32 %v72_v43, 16 }
  0x2c   :  { %v77_v48 = vxor.u32 %v73_v44, %v69_v40  ;;  %v78_v50 = vxor.u32 %v74_v45, %v70_v41 }
  0x2d   :  { %v79_v52 = vxor.u32 %v75_v46, %v71_v42  ;;  %v80_v54 = vxor.u32 %v76_v47, %v72_v43 }
  0x2e   :  { %vm81_vm0 = vcmp.lt.u32.totalorder %v77_v48, 3006477107  ;;  %vm82_vm1 = vcmp.lt.u32.totalorder %v78_v50, 3006477107 }
  0x2f   :  { %v89_v56 = vsel %vm81_vm0, %v85_v49, 0.0  ;;  %v90_v57 = vsel %vm82_vm1, %v86_v51, 0.0  ;;  %vm83_vm2 = vcmp.lt.u32.totalorder %v79_v52, 3006477107  ;;  %vm84_vm3 = vcmp.lt.u32.totalorder %v80_v54, 3006477107 }
  0x30   :  { %93 = vst [vmem:[#allocation7] sm:$0xff] %v89_v56  ;;  %94 = vst [vmem:[#allocation7 + $0x8] sm:$0xff] %v90_v57  ;;  %v91_v58 = vsel %vm83_vm2, %v87_v53, 0.0  ;;  %v92_v59 = vsel %vm84_vm3, %v88_v55, 0.0 }
  0x31   :  { %95 = vst [vmem:[#allocation7 + $0x10] sm:$0xff] %v91_v58  ;;  %96 = vst [vmem:[#allocation7 + $0x18] sm:$0xff] %v92_v59 }
  0x32   :  { %147 = shalt.err (!%p144_p12)
}
  0x33   :  { %s148_s27 = scalar_lea.hbm %s208_s2, 512 }
  0x34   :  { %p149_p13 = scmp.ne.s32.totalorder %s208_s2, %s148_s27  ;;  %p152_p0 = scmp.lt.u32.totalorder %s148_s27, %s208_s2 }
  0x36   :  { %p154_p1 = pnand %p152_p0, %p149_p13 }
  0x38   :  { %157 = shalt.err (!%p154_p1)
}
  0x39   :  { %106 = dma.vmem_to_hbm [thread:$0]  %s104_s1, 512, %s208_s2, [#allocation6]  }
  0x3a   :  { %160 = dma.done.wait [#allocation6], 512  }
  0x3b   :  { %161 = vsyncadd [#allocation6], 4294966784 }
  0x3c   :  { %110 = vsyncpa [#allocation5], 1 }
  0x3d   :  { %111 = vsyncpa [#allocation6], 1 }

</bundles_post_ra>
